<compile_context>
chip_gen: v6e
topology: v6e:2x2x1
jax: 0.10.0
libtpu: 0.0.40
codegen_flags: <defaults>
</compile_context>

<pallas_src>
import jax
import jax.numpy as jnp
from jax.experimental import pallas as pl
from jax.experimental.pallas import tpu as pltpu

DEFAULT_TILE_LANES = 131072  # 4 MiB per (8 x TILE) f32 VMEM buffer


def _cdiv(a, b):
    return -(-a // b)


# ----------------------------------------------------------------------------
# Kernel: lane-dense particle tracking   out_T = tm @ p_T
# ----------------------------------------------------------------------------
def _particle_track_kernel(tm_ref, pT_ref, outT_ref):
    # tm_ref:   (7, 7)     float32 transfer map (resident across all grid steps)
    # pT_ref:   (7, TILE)  lane-dense tile of lane-major particles
    # outT_ref: (7, TILE)
    p = pT_ref[...].astype(jnp.float32)  # keep map & accumulation in f32 even for bf16 beams
    out = jnp.dot(tm_ref[...], p, preferred_element_type=jnp.float32)
    outT_ref[...] = out.astype(outT_ref.dtype)


def _choose_tiling(num_lanes, tile_lanes):
    """Pick (n_tiles, lane_tile): lane_tile a multiple of 128, work-first sizing.

    - n_tiles = cdiv(work, tile): zero-padding stays < 128 lanes per tile.
    - n_tiles >= 2 whenever there is more than one 128-lane group, so both
      TensorCores of a v7x chip get work under the "parallel" grid axis.
    """
    groups = max(_cdiv(num_lanes, 128), 1)
    max_groups_per_tile = max(tile_lanes // 128, 1)
    n_tiles = _cdiv(groups, max_groups_per_tile)
    if groups >= 2:
        n_tiles = max(n_tiles, 2)
    groups_per_tile = _cdiv(groups, n_tiles)
    n_tiles = _cdiv(groups, groups_per_tile)  # no fully out-of-range tiles
    return n_tiles, groups_per_tile * 128


def aligned_lane_width(total, tile_lanes=DEFAULT_TILE_LANES):
    """Smallest width >= total that the tiling reproduces exactly (fixed point)."""
    width = max(int(total), 1)
    for _ in range(4):
        n_tiles, lane_tile = _choose_tiling(width, tile_lanes)
        padded = n_tiles * lane_tile
        if padded == width:
            break
        width = padded
    return width


# ----------------------------------------------------------------------------
# Persistent lane-major layout (review option (a)): convert once at ingest /
# egress; every Element tracked in between costs exactly 1 HBM read + 1 write
# (or a single pass for a whole beamline via compose_transfer_maps).
# ----------------------------------------------------------------------------
def particles_to_lane_major(particles, tile_lanes=DEFAULT_TILE_LANES):
    """(B, N, 7) -> (7, P) lane-major layout, zero-padded to an aligned width."""
    B, N, D = particles.shape
    assert D == 7
    total = B * N
    pT = particles.reshape(total, 7).T
    padded = aligned_lane_width(total, tile_lanes)
    if padded != total:
        pT = jnp.pad(pT, ((0, 0), (0, padded - total)))
    return pT


def lane_major_to_particles(pT, B, N):
    """(7, P) lane-major layout -> (B, N, 7)."""
    return pT[:, : B * N].T.reshape(B, N, 7)


def track_lane_major(tm, pT, *, tile_lanes=DEFAULT_TILE_LANES):
    """Hot path: out_T = tm @ p_T on the persistent (7, P) lane-major layout."""
    seven, P = pT.shape
    assert seven == 7
    n_tiles, lane_tile = _choose_tiling(P, tile_lanes)
    padded = n_tiles * lane_tile
    needs_pad = padded != P  # never taken for ingest-aligned arrays
    pT_in = jnp.pad(pT, ((0, 0), (0, padded - P))) if needs_pad else pT

    # One (8 x lane_tile) f32 buffer; x2 double-buffering x2 (in + out) + slack,
    # capped well below v7x's 64 MiB physical VMEM per TensorCore.
    buf_bytes = 8 * lane_tile * 4
    vmem_limit = int(min(48 * 1024 * 1024,
                         max(16 * 1024 * 1024, 4 * buf_bytes + 8 * 1024 * 1024)))

    outT = pl.pallas_call(
        _particle_track_kernel,
        out_shape=jax.ShapeDtypeStruct((7, padded), pT.dtype),
        grid_spec=pltpu.PrefetchScalarGridSpec(
            num_scalar_prefetch=0,
            grid=(n_tiles,),  # single long parallel axis -> even megacore split on v7x
            in_specs=[
                pl.BlockSpec((7, 7), lambda i: (0, 0)),          # resident, DMA'd once
                pl.BlockSpec((7, lane_tile), lambda i: (0, i)),
            ],
            out_specs=pl.BlockSpec((7, lane_tile), lambda i: (0, i)),
        ),
        compiler_params=pltpu.CompilerParams(
            dimension_semantics=("parallel",),
            vmem_limit_bytes=vmem_limit,
        ),
    )(tm.astype(jnp.float32), pT_in)

    return outT[:, :P] if needs_pad else outT


def compose_transfer_maps(tms):
    """Fold k element maps (applied tms[0] first) into one 7x7 map in plain JAX."""
    total = tms[0].astype(jnp.float32)
    for tm in tms[1:]:
        total = tm.astype(jnp.float32) @ total
    return total


def track_particle_beam(tm, particles, s, length, *, tile_lanes=DEFAULT_TILE_LANES):
    """Convenience (B, N, 7) API for a single Element.

    NOTE: pays one ingest + one egress relayout pass over HBM.  For beamlines or
    repeated tracking, convert once with particles_to_lane_major, track with
    track_lane_major (ideally on compose_transfer_maps(...)), convert back once.
    """
    B, N, _ = particles.shape
    pT = particles_to_lane_major(particles, tile_lanes)
    outT = track_lane_major(tm, pT, tile_lanes=tile_lanes)
    new_particles = lane_major_to_particles(outT, B, N)
    new_s = s + length
    return new_particles, new_s


def track_parameter_beam(tm, mu, cov, s, length):
    """ParameterBeam path: new_mu = tm @ mu ; new_cov = tm @ cov @ tm.T.

    Deliberately plain JAX: ~700 FLOPs; a Pallas kernel's dispatch + (8,128)
    VMEM padding would dominate by orders of magnitude.
    """
    new_mu = tm @ mu
    new_cov = tm @ cov @ tm.T
    new_s = s + length
    return new_mu, new_cov, new_s


# ----------------------------------------------------------------------------
# Deterministic "transfer map": a drift of length L for an electron beam.
# (Element itself leaves transfer_map abstract; this is a concrete synthetic
#  7x7 affine map using the documented phase-space convention.)
# ----------------------------------------------------------------------------
def drift_transfer_map(length_m, energy_ev):
    rest_energy_ev = 0.510998950e6  # electron
    gamma = jnp.maximum(energy_ev / rest_energy_ev, 1.0 + 1e-9)  # clamp: no NaN below rest energy
    igamma2 = 1.0 / (gamma * gamma)
    beta = jnp.sqrt(1.0 - igamma2)
    tm = jnp.eye(7, dtype=jnp.float32)
    tm = tm.at[0, 1].set(length_m)                              # x  += L * px
    tm = tm.at[2, 3].set(length_m)                              # y  += L * py
    tm = tm.at[4, 5].set(-length_m / (beta * beta) * igamma2)   # tau coupling
    return tm


# ----------------------------------------------------------------------------
# Pure-JAX references for correctness check
# ----------------------------------------------------------------------------
def _particle_ref(tm, particles):
    return jnp.einsum("bnd,ed->bne", particles, tm)


def _parameter_ref(tm, mu, cov):
    return tm @ mu, tm @ cov @ tm.T


# TODO(synk): name sanitisation, clone/split, plotting and 3D-mesh loading from
# the original Element are pure Python/IO bookkeeping with no Pallas equivalent.

if __name__ == "__main__":
    key = jax.random.PRNGKey(0)
    k1, k2, k3 = jax.random.split(key, 3)

    energy = jnp.float32(1.0e8)   # reference beam energy in eV
    s0 = jnp.float32(0.0)

    # ParticleBeam-style input: (batch=2, num_particles=300, 7)
    # (non-multiple of 128 to exercise the alignment path)
    particles = jax.random.normal(k1, (2, 300, 7), dtype=jnp.float32) * 1e-3
    B, N, _ = particles.shape

    # --- Beamline of three Elements, persistent lane-major layout -------------
    lengths = [jnp.float32(0.5), jnp.float32(1.0), jnp.float32(0.25)]
    tms = [drift_transfer_map(L, energy) for L in lengths]

    tm_total = compose_transfer_maps(tms)           # plain-JAX 7x7 composition
    pT = particles_to_lane_major(particles)         # ingest: one relayout pass
    outT = track_lane_major(tm_total, pT)           # ONE kernel pass for 3 elements
    beamline_out = lane_major_to_particles(outT, B, N)   # egress
    s_beamline = s0 + sum(lengths)
    jax.block_until_ready(beamline_out)

    # --- Single-Element convenience (B, N, 7) API -----------------------------
    single_out, s_single = track_particle_beam(tms[0], particles, s0, lengths[0])
    jax.block_until_ready(single_out)

    # --- ParameterBeam path (plain JAX) ----------------------------------------
    mu = jax.random.normal(k2, (7,), dtype=jnp.float32) * 1e-3
    a = jax.random.normal(k3, (7, 7), dtype=jnp.float32) * 1e-3
    cov = a @ a.T + 1e-6 * jnp.eye(7, dtype=jnp.float32)
    new_mu, new_cov, s_param = track_parameter_beam(tms[0], mu, cov, s0, lengths[0])
    jax.block_until_ready((new_mu, new_cov))

    # --- Correctness checks against pure-JAX references ------------------------
    ref_beamline = particles
    for tm in tms:
        ref_beamline = _particle_ref(tm, ref_beamline)
    ref_single = _particle_ref(tms[0], particles)
    ref_mu, ref_cov = _parameter_ref(tms[0], mu, cov)

    assert beamline_out.shape == particles.shape
    assert jnp.allclose(beamline_out, ref_beamline, atol=1e-6, rtol=1e-5)
    assert jnp.allclose(single_out, ref_single, atol=1e-6, rtol=1e-5)
    assert jnp.allclose(new_mu, ref_mu, atol=1e-6, rtol=1e-5)
    assert jnp.allclose(new_cov, ref_cov, atol=1e-6, rtol=1e-5)
    assert jnp.allclose(s_beamline, s0 + 1.75)
    assert jnp.allclose(s_single, s0 + 0.5)
    assert jnp.allclose(s_param, s0 + 0.5)

    print("KERNEL_OK")
</pallas_src>

<mosaic_0001>
module attributes {stable_mosaic.version = 11 : i64} {
  func.func @_particle_track_kernel(%arg0: i32, %arg1: memref<7x7xf32, #tpu.memory_space<vmem>>, %arg2: memref<7x384xf32, #tpu.memory_space<vmem>>, %arg3: memref<7x384xf32, #tpu.memory_space<vmem>>) attributes {dimension_semantics = [#tpu.dimension_semantics<parallel>], iteration_bounds = array<i64: 2>, scalar_prefetch = 0 : i64, scratch_operands = 0 : i64, tpu.core_type = #tpu.core_type<tc>, window_params = [{pipeline_mode = #tpu.pipeline_mode<synchronous>, transform_indices = @transform_0, window_bounds = array<i64: 7, 7>}, {transform_indices = @transform_1, window_bounds = array<i64: 7, 384>}, {transform_indices = @transform_2, window_bounds = array<i64: 7, 384>}]} {
    %c0 = arith.constant 0 : index
    %c0_0 = arith.constant 0 : index
    %0 = vector.load %arg2[%c0, %c0_0] : memref<7x384xf32, #tpu.memory_space<vmem>>, vector<7x384xf32>
    %c0_1 = arith.constant 0 : index
    %c0_2 = arith.constant 0 : index
    %1 = vector.load %arg1[%c0_1, %c0_2] : memref<7x7xf32, #tpu.memory_space<vmem>>, vector<7x7xf32>
    %cst = arith.constant dense<0.000000e+00> : vector<7x384xf32>
    %2 = tpu.matmul %1, %0, %cst {dimension_numbers = #tpu.dot_dimension_numbers<[1], [0], [0], [1], [0, 0, 1, 1], [], []>} : vector<7x7xf32>, vector<7x384xf32>, vector<7x384xf32> -> vector<7x384xf32>
    %c0_3 = arith.constant 0 : index
    %c0_4 = arith.constant 0 : index
    %3 = vector.load %arg3[%c0_3, %c0_4] : memref<7x384xf32, #tpu.memory_space<vmem>>, vector<7x384xf32>
    tpu.vector_store %arg3[%c0_3, %c0_4], %2 {strides = array<i32>} : memref<7x384xf32, #tpu.memory_space<vmem>>, vector<7x384xf32>,
    return
  }
  func.func @transform_0(%arg0: i32) -> (i32, i32) {
    %c0_i32 = arith.constant 0 : i32
    %c0_i32_0 = arith.constant 0 : i32
    %c0_i32_1 = arith.constant 0 : i32
    return %c0_i32, %c0_i32_0 : i32, i32
  }
  func.func @transform_1(%arg0: i32) -> (i32, i32) {
    %c0_i32 = arith.constant 0 : i32
    %c0_i32_0 = arith.constant 0 : i32
    return %c0_i32, %arg0 : i32, i32
  }
  func.func @transform_2(%arg0: i32) -> (i32, i32) {
    %c0_i32 = arith.constant 0 : i32
    %c0_i32_0 = arith.constant 0 : i32
    return %c0_i32, %arg0 : i32, i32
  }
}

</mosaic_0001>

<bundles_post_ra>
// kernel: tpu_custom_call.1
= control target key start
LH: loop header
LB: loop body
LE: loop exit
PB: predicated region body
PF: predicated region fallthrough
CT: control target
= control target key end

     0   :  { %7 = vsyncpa [#allocation3], 0  ;;  %s835_s0 = inlined_call_operand.hbm [shape: f32[7,7], index: 0, kind: input, shape index: {}]   ;;  %s836_s1 = inlined_call_operand.hbm [shape: f32[7,768], index: 1, kind: input, shape index: {}]   ;;  %s837_s2 = inlined_call_operand.hbm [shape: f32[7,768], index: 2, kind: output, shape index: {}]  }
   0x1   :  { %8 = vsyncpa [#allocation6], 0 }
   0x2   :  { %10 = vsyncpa [#allocation6 + $0x1], 0 }
   0x3   :  { %11 = vsyncpa [#allocation4], 0 }
   0x4   :  { %13 = vsyncpa [#allocation4 + $0x1], 0  ;;  %s663_s9 = smov 0   ;;  %s665_s10 = smov 0  }
   0x5   :  { %s667_s11 = smov 0   ;;  %s669_s12 = smov 0  }
   0x6 LB: > { %s684_s13 = sadd.s32 4294967295, %s641_s12   ;;  %s434_s14 = sadd.s32 4294967294, %s641_s12   ;;  %s641_s12 = sphi %s669_s12, %s860_s12   ;;  %s637_s11 = sphi %s667_s11, %s859_s11   ;;  %s633_s10 = sphi %s665_s10, %s858_s10   ;;  %s629_s9 = sphi %s663_s9, %s857_s9  }
   0x7   : > { %p60_p0 = scmp.ne.s32.totalorder %s633_s10, %s629_s9  ;;  %p838_p1 = scmp.eq.s32.totalorder %s684_s13, 0 }
   0x8   : > { %p90_p3 = scmp.eq.s32.totalorder %s434_s14, 1  ;;  %p435_p5 = scmp.ge.s32.totalorder %s641_s12, 1 }
   0x9   : > { %p693_p4 = por %p838_p1, %p60_p0  ;;  %p97_p7 = scmp.lt.s32.totalorder %s641_s12, 3 }
   0xa   : > { %p698_p6 = por %p90_p3, %p60_p0  ;;  %s643_s18 = smov [#allocation2]  }
   0xb   : > { %s842_s15 = scalar_select %p693_p4, 1, 0 }
   0xc   : > { %s843_s16 = scalar_select %p698_p6, 1, 0 }
   0xd   : > { %p703_p8 = pnand %p435_p5, %p97_p7  ;;  %s110_s19 = sshll.u32 %s643_s18, 4  ;;  %s111_s19 = int_to_ptr.vmem [resolvable:$true] %s110_s19 }
   0xe   : > { %s711_s20 = sadd.s32 1, %s641_s12   ;;  %s47_s24 = sadd.s32 1, %s637_s11 }
   0xf   : > { %s844_s17 = scalar_select %p703_p8, 1, 0 }
  0x10   : > { %p468_p10 = pneg %p703_p8  ;;  %s44_s22 = ssub.s32 %s641_s12, %s711_s20 }
  0x11   : > { %p721_p12 = scmp.eq.s32.totalorder %s44_s22, 0  ;;  %p54_p13 = scmp.ne.s32.totalorder %s637_s11, %s633_s10 }
  0x12   : > { %p715_p11 = pnand %p468_p10, %p838_p1  ;;  %s530_s25 = scalar_lea.vmem %s111_s19, 128 }
  0x13   : > { %p531_p3 = scmp.ne.s32.totalorder %s111_s19, %s530_s25  ;;  %p538_p9 = scmp.lt.s32.totalorder %s111_s19, %s111_s19 }
  0x14   : > { %p521_p0 = pneg %p715_p11  ;;  %p539_p2 = scmp.lt.s32.totalorder %s530_s25, %s530_s25 }
  0x16   : > { %p533_p5 = pnand %p531_p3, %p521_p0  ;;  %p540_p10 = por %p539_p2, %p538_p9 }
  0x18   : > { %p534_p7 = pneg %p533_p5 }
  0x1a   : > { %p541_p1 = pnand %p540_p10, %p534_p7 }
  0x1c   : > { %544 = shalt.err (!%p541_p1)
}
  0x1d   : > { %471 = dma.hbm_to_vmem [thread:$0]  (!%p715_p11), %s835_s0, 128, %s111_s19, [#allocation3]  }
  0x1e   : > { %s738_s28 = scalar_select %p721_p12, %s637_s11, %s47_s24  }
  0x1f   : > { %p55_p1 = scmp.eq.s32.totalorder %s641_s12, 0  ;;  %p847_p2 = scmp.eq.s32.totalorder %s684_s13, 1 }
  0x20   : > { %p481_p0 = scmp.lt.s32.totalorder %s641_s12, 2  ;;  %s121_s30 = sand.u32 1, %s637_s11  }
  0x21   : > { %p746_p9 = por %p847_p2, %p54_p13  ;;  %p56_p3 = por %p55_p1, %p54_p13 }
  0x22   : > { %s458_s3 = smul.u32 24, %s121_s30  ;;  %s122_s19 = scalar_lea.sflag [#allocation6], %s121_s30 }
  0x23   : > { %s848_s29 = scalar_select %p746_p9, 1, 0 }
  0x24   : > { %s449_s4 = smul.u32 384, %s641_s12  ;;  %p756_p5 = pnand %p481_p0, %p56_p3 }
  0x25   : > { %s125_s14 = scalar_lea.vmem [#allocation5], %s458_s3  ;;  %s550_s24 = scalar_lea.hbm %s836_s1, 768 }
  0x26   : > { %s763_s8 = scalar_lea.hbm %s836_s1, %s449_s4  ;;  %s133_s18 = sshll.u32 %s125_s14, 4  ;;  %s134_s18 = int_to_ptr.vmem [resolvable:$true] %s133_s18 }
  0x27   : > { %s545_s21 = scalar_lea.hbm %s763_s8, 384  ;;  %p547_p12 = pneg %p756_p5 }
  0x28   : > { %p546_p11 = scmp.ne.s32.totalorder %s763_s8, %s545_s21  ;;  %p551_p10 = scmp.lt.s32.totalorder %s763_s8, %s836_s1 }
  0x29   : > { %p552_p1 = scmp.lt.s32.totalorder %s550_s24, %s545_s21 }
  0x2a   : > { %p548_p13 = pnand %p547_p12, %p546_p11 }
  0x2b   : > { %p553_p2 = por %p552_p1, %p551_p10 }
  0x2c   : > { %p549_p7 = pneg %p548_p13 }
  0x2e   : > { %p554_p0 = pnand %p553_p2, %p549_p7 }
  0x30   : > { %557 = shalt.err (!%p554_p0)
}
  0x31   : > { %s558_s27 = scalar_lea.vmem %s134_s18, 384  ;;  %s644_s30 = smov [#allocation5]  }
  0x32   : > { %p559_p3 = scmp.ne.s32.totalorder %s134_s18, %s558_s27  ;;  %s563_s3 = sshll.u32 %s644_s30, 4  ;;  %s564_s3 = int_to_ptr.vmem [resolvable:$false] %s563_s3 }
  0x33   : > { %s565_s4 = scalar_lea.vmem %s564_s3, 768  ;;  %p566_p11 = scmp.lt.s32.totalorder %s134_s18, %s564_s3 }
  0x34   : > { %p561_p6 = pnand %p559_p3, %p547_p12  ;;  %p567_p13 = scmp.lt.s32.totalorder %s565_s4, %s558_s27 }
  0x36   : > { %p562_p9 = pneg %p561_p6  ;;  %p568_p4 = por %p567_p13, %p566_p11 }
  0x38   : > { %p569_p8 = pnand %p568_p4, %p562_p9 }
  0x3a   : > { %572 = shalt.err (!%p569_p8)
}
  0x3b   : > { %475 = dma.hbm_to_vmem [thread:$0]  (!%p756_p5), %s763_s8, 384, %s134_s18, %s122_s19  }
  0x3c   : > { %p850_p7 = scmp.ne.s32.totalorder %s844_s17, 0 }
  0x3d   : > { %p851_p10 = scmp.eq.s32.totalorder (!%p850_p7), %s684_s13, 0 }
  0x3e   : > { %142 = sbr.rel (%p850_p7) target bundleno = 285 (0x11d), region = 28 }
  0x43   : > { %616 = dma.done.wait (%p851_p10), [#allocation3], 128   ;;  %p852_p6 = pmov %p851_p10 }
  0x44   : > { %s786_s6 = sand.u32 1, %s633_s10   ;;  %p853_p4 = scmp.ne.s32.totalorder %s842_s15, 0 }
  0x45   : > { %618 = vsyncadd (%p852_p6), [#allocation3], 4294967168  ;;  %s459_s7 = smul.u32 24, %s786_s6  ;;  %s149_s14 = scalar_lea.sflag [#allocation6], %s786_s6 }
  0x47   : > { %s152_s5 = scalar_lea.vmem [#allocation5], %s459_s7 }
  0x48   : > { %620 = dma.done.wait (%p853_p4), %s149_s14, 384  }
  0x49   : > { %622 = vsyncadd (%p853_p4), %s149_s14, 4294966912  ;;  %v645_v0 = vmov 0.0   ;;  %vm646_vm0 = vmmov 0   ;;  %vm183_vm1 = vcmask 1046528   ;;  %vm179_vm2 = vcmask 56320   ;;  %s172_s15 = scalar_lea.vmem [#allocation7], %s459_s7 }
  0x4a   : > { %453 = vmatprep.subr.mxu1 %v645_v0  ;;  %257 = vmatprep.mubr.f32.mxu0 %v645_v0  ;;  %v176_v1 = vld [vmem:[%s152_s5 + $0x8] sm:$0x7f]  ;;  %v175_v2 = vld [vmem:[%s152_s5] sm:$0x7f]  ;;  %v177_v3 = vld [vmem:[%s152_s5 + $0x10] sm:$0x7f] }
  0x4b   : > { %455 = vmatprep.mubr.msk.f32.mxu1 %vm646_vm0, %v645_v0  ;;  %441 = vmatprep.subr.msk.mxu0 %vm183_vm1, %v176_v1  ;;  %v178_v4 = vld [vmem:[#allocation2] sm:$0x7f]  ;;  %s352_s17 = sshll.u32 %s172_s15, 4  ;;  %s450_s8 = smul.u32 384, %s684_s13  ;;  %s795_s17 = int_to_ptr.vmem [resolvable:$true] %s352_s17 }
  0x4c   : > { %454 = vmatpush3.msk.msra.mxu1 %vm183_vm1, %v177_v3  ;;  %442 = vmatpush1.msk.msra.mxu0 %vm183_vm1, %v175_v2  ;;  %s338_s22 = scalar_lea.sflag [#allocation4], %s786_s6  ;;  %s573_s23 = scalar_lea.vmem %s795_s17, 384 }
  0x4d   : > { %456 = vmatmul.mubr.msk.f32.vlgmr.msra.gmra.mxu1 %vm179_vm2, %v178_v4  ;;  %443 = vmatmul.mubr.msk.f32.vlgmr.msra.gmra.mxu0 %vm179_vm2, %v178_v4  ;;  %s350_s21 = scalar_lea.hbm %s837_s2, %s450_s8  ;;  %p574_p8 = scmp.ne.s32.totalorder %s795_s17, %s573_s23 }
  0x4e   : > { %p854_p9 = scmp.ne.s32.totalorder %s848_s29, 0  ;;  %s647_s13 = smov [#allocation7]  }
  0x4f   : > { %s577_s24 = sshll.u32 %s647_s13, 4  ;;  %s578_s24 = int_to_ptr.vmem [resolvable:$false] %s577_s24 }
  0x50   : > { %p575_p5 = pnand %p574_p8, %p854_p9  ;;  %s579_s25 = scalar_lea.vmem %s578_s24, 768 }
  0x51   : > { %p580_p1 = scmp.lt.s32.totalorder %s795_s17, %s578_s24  ;;  %p581_p2 = scmp.lt.s32.totalorder %s579_s25, %s573_s23 }
  0x52   : > { %p576_p12 = pneg %p575_p5 }
  0x53   : > { %p582_p0 = por %p581_p2, %p580_p1 }
  0x55   : > { %p583_p3 = pnand %p582_p0, %p576_p12 }
 0x10d   : > { %v330_v5 = vpop.f32.mrf.mxu1  ;;  %v259_v6 = vpop.f32.mrf.mxu0 }
 0x10e   : > { %336 = vst [vmem:[%s172_s15 + $0x10] sm:$0x7f] %v330_v5  ;;  %334 = vst [vmem:[%s172_s15] sm:$0x7f] %v259_v6 }
 0x10f   : > { %v457_v7 = vpop.f32.mrf.mxu1  ;;  %v261_v8 = vpop.f32.mrf.mxu0 }
 0x110   : > { %335 = vst [vmem:[%s172_s15 + $0x8] sm:$0x7f] %v261_v8 }
 0x111   : > { %586 = shalt.err (!%p583_p3)
}
 0x112   : > { %s587_s26 = scalar_lea.hbm %s350_s21, 384  ;;  %s591_s3 = scalar_lea.hbm %s837_s2, 768 }
 0x113   : > { %p588_p11 = scmp.ne.s32.totalorder %s350_s21, %s587_s26  ;;  %p592_p10 = scmp.lt.s32.totalorder %s350_s21, %s837_s2 }
 0x114   : > { %p593_p6 = scmp.lt.s32.totalorder %s591_s3, %s587_s26 }
 0x115   : > { %p589_p13 = pnand %p588_p11, %p854_p9 }
 0x116   : > { %p594_p4 = por %p593_p6, %p592_p10 }
 0x117   : > { %p590_p7 = pneg %p589_p13 }
 0x119   : > { %p595_p8 = pnand %p594_p4, %p590_p7 }
 0x11b   : > { %598 = shalt.err (!%p595_p8)
}
 0x11c   : > { %466 = dma.vmem_to_hbm [thread:$0]  (%p854_p9), %s795_s17, 384, %s350_s21, %s338_s22  }
 0x11d PF: > { %s364_s7 = sand.u32 1, %s629_s9   ;;  %p855_p5 = scmp.ne.s32.totalorder %s843_s16, 0 }
 0x11e   : > { %p856_p12 = scmp.ge.s32.totalorder %s641_s12, 2  ;;  %s365_s14 = scalar_lea.sflag [#allocation4], %s364_s7 }
 0x120   : > { %p477_p1 = pnand %p856_p12, %p855_p5 }
 0x122   : > { %p478_p2 = pneg %p477_p1 }
 0x124   : > { %624 = dma.done.wait (%p478_p2), %s365_s14, 384  }
 0x125   : > { %626 = vsyncadd (%p478_p2), %s365_s14, 4294966912  ;;  %p16_p0 = scmp.ge.s32.totalorder %s711_s20, 4   ;;  %s857_s9 = smov %s633_s10 }
 0x126   : > { %s858_s10 = smov %s637_s11  ;;  %s859_s11 = smov %s738_s28 }
 0x127   : > { %s860_s12 = smov %s711_s20  ;;  %18 = sbr.rel (!%p16_p0) target bundleno = 6 (0x6), region = 78 }
 0x12c   :  { %370 = vsyncpa [#allocation3], 1 }
 0x12d   :  { %372 = vsyncpa [#allocation3 + $0x1], 1 }
 0x12e   :  { %373 = vsyncpa [#allocation6], 1 }
 0x12f   :  { %375 = vsyncpa [#allocation6 + $0x1], 1 }
 0x130   :  { %376 = vsyncpa [#allocation4], 1 }
 0x131   :  { %378 = vsyncpa [#allocation4 + $0x1], 1 }

</bundles_post_ra>
